<compile_context>
chip_gen: v7x
topology: tpu7x:2x2x1
jax: 0.10.0
libtpu: 0.0.40
codegen_flags: <defaults>
</compile_context>

<pallas_src>
import math
from dataclasses import dataclass, field
from typing import Dict, List, Optional, Tuple

import numpy as np
import jax
import jax.numpy as jnp
from jax import lax
from jax.experimental import pallas as pl
from jax.experimental.pallas import tpu as pltpu

LANE = 128
_NT_DIMS = (((1,), (1,)), ((), ()))   # contract last dims: A[., K] x B[., K] -> A @ B^T


def _round_up(x: int, m: int) -> int:
    return ((x + m - 1) // m) * m


# ----------------------------------------------------------------------------
# Program / question data structures
# ----------------------------------------------------------------------------

@dataclass
class ProgramOp:
    operator: str
    input_ids: Tuple[int, ...] = ()
    attribute: Optional[str] = None
    concept: Optional[str] = None


@dataclass
class Question:
    program: List[ProgramOp] = field(default_factory=list)


_SUPPORTED = ('scene', 'query', 'filter', 'unique', 'query_attribute_equal',
              'count', 'exist', 'union')


# ----------------------------------------------------------------------------
# ReasoningModule: one fused Pallas kernel per distinct program
# ----------------------------------------------------------------------------

class ReasoningModule:
    """JAX/Pallas port of nscl ReasoningModule.forward.

    The soft executor's whole program runs inside one Pallas kernel; the
    Python dispatch loop only runs at trace/compile time.
    """

    def __init__(self, concept_embeddings: Dict[str, jnp.ndarray],
                 attribute_values: Dict[str, List[str]]):
        # Order concepts: attribute concepts first (contiguous per attribute),
        # then any remaining filter-only concepts.
        ordered: List[str] = []
        self.attr_slice: Dict[str, Tuple[int, int]] = {}
        for attr, vals in attribute_values.items():
            self.attr_slice[attr] = (len(ordered), len(vals))
            ordered.extend(vals)
        for name in concept_embeddings:
            if name not in ordered:
                ordered.append(name)
        self.concept_index = {name: i for i, name in enumerate(ordered)}
        self.attribute_values = {a: list(v) for a, v in attribute_values.items()}

        embs = np.stack([np.asarray(concept_embeddings[name], np.float32).reshape(-1)
                         for name in ordered], axis=0)
        self.d_real = int(embs.shape[1])
        self.c_real = int(embs.shape[0])
        self.d_pad = _round_up(self.d_real, LANE)
        self.c_pad = _round_up(self.c_real, LANE)

        cm = np.zeros((self.c_pad, self.d_pad), np.float32)
        cm[:self.c_real, :self.d_real] = embs
        self.concepts_pad = jnp.asarray(cm)        # [C_pad, D_pad]
        self._cache = {}

    # ---- program "compilation": resolve names to static indices ------------
    def _compile_program(self, question):
        compiled = []
        for p in question.program:
            if p.operator not in _SUPPORTED:
                # Keep the original module's semantics: warn and execute the prefix.
                print(f'Operator not implemented {p.operator}')
                break
            cidx = self.concept_index[p.concept] if p.operator == 'filter' else None
            aslice = (self.attr_slice[p.attribute]
                      if p.operator in ('query', 'query_attribute_equal') else None)
            compiled.append((p.operator, tuple(int(i) for i in p.input_ids),
                             cidx, aslice))
        if not compiled:
            raise ValueError('empty or fully-unsupported program')
        return tuple(compiled)

    @staticmethod
    def _result_kind(ops):
        kinds = []
        for (operator, _ids, _cidx, aslice) in ops:
            if operator in ('scene', 'filter', 'unique', 'union'):
                kinds.append(('mask', None))
            elif operator == 'query':
                kinds.append(('query', aslice))
            else:  # count / exist / query_attribute_equal
                kinds.append(('scalar', None))
        return kinds[-1]

    # ---- fused kernel builder ----------------------------------------------
    def _build_kernel(self, ops, n_pad, out_kind):
        d_real, c_pad = self.d_real, self.c_pad
        inv_sqrt_d = 1.0 / math.sqrt(d_real)
        NEG = -1e30

        needs_table = any(op in ('filter', 'query', 'query_attribute_equal')
                          for (op, _, _, _) in ops)
        filter_cids = sorted({cidx for (op, _, cidx, _) in ops if op == 'filter'})

        def kernel(nreal_ref, obj_ref, con_ref, out_ref):
            n_real = nreal_ref[0]
            obj_idx = lax.broadcasted_iota(jnp.int32, (1, n_pad), 1)
            scene_mask = (obj_idx < n_real).astype(jnp.float32)        # [1, N_pad]
            con_idx = lax.broadcasted_iota(jnp.int32, (1, c_pad), 1)

            if needs_table:
                # Raw logits L[c, n] = <concept_c, object_n>: a single D
                # contraction (no transposed operand duplicates needed).
                logits = lax.dot_general(con_ref[...], obj_ref[...], _NT_DIMS,
                                         preferred_element_type=jnp.float32)

            # Sigmoid only on the rows the static program actually filters with.
            sim_rows = {}
            for c in filter_cids:
                sim_rows[c] = jax.nn.sigmoid(logits[c:c + 1, :] * inv_sqrt_d)

            def query(dist, start, cnt):
                # (dist @ obj) @ con^T == dist @ L^T  (associativity): reuse
                # the logits table, one small matmul instead of two.
                scores = lax.dot_general(dist, logits, _NT_DIMS,
                                         preferred_element_type=jnp.float32)
                scores = scores * inv_sqrt_d                            # [1, C_pad]
                in_attr = (con_idx >= start) & (con_idx < start + cnt)
                # masked softmax over the attribute's concepts (off-attr -> 0)
                return jax.nn.softmax(jnp.where(in_attr, scores, NEG), axis=-1)

            bufs = []
            for (operator, input_ids, cidx, aslice) in ops:
                ins = [bufs[i] for i in input_ids]
                if operator == 'scene':
                    bufs.append(scene_mask)
                elif operator == 'filter':
                    bufs.append(jnp.minimum(ins[0], sim_rows[cidx]))
                elif operator == 'unique':
                    total = jnp.sum(ins[0], axis=-1, keepdims=True)
                    inv = pl.reciprocal(total + 1e-8, approx=True)      # EUP slot
                    bufs.append(ins[0] * inv)
                elif operator == 'union':
                    bufs.append(jnp.maximum(ins[0], ins[1]))
                elif operator == 'count':
                    bufs.append(jnp.sum(ins[0], axis=-1, keepdims=True))
                elif operator == 'exist':
                    bufs.append(jnp.max(ins[0], axis=-1, keepdims=True))
                elif operator == 'query':
                    start, cnt = aslice
                    bufs.append(query(ins[0], start, cnt))
                elif operator == 'query_attribute_equal':
                    start, cnt = aslice
                    qa = query(ins[0], start, cnt)
                    qb = query(ins[1], start, cnt)
                    bufs.append(jnp.sum(qa * qb, axis=-1, keepdims=True))

            result = bufs[-1]
            kind, _meta = out_kind
            if kind == 'scalar':
                # Lane-dense, shape-stable store; the wrapper slices [:, :1].
                out_ref[...] = jnp.broadcast_to(result, (1, LANE))
            else:
                # Already lane-dense padded: [1, N_pad] (mask) or [1, C_pad] (query).
                out_ref[...] = result

        return kernel

    # ---- executor cache: one jitted (pad -> kernel -> slice) per program ----
    def _get_executor(self, ops, n_pad):
        key = (ops, n_pad)
        fn = self._cache.get(key)
        if fn is not None:
            return fn

        out_kind = self._result_kind(ops)
        kind, meta = out_kind
        if kind == 'mask':
            out_cols = n_pad
        elif kind == 'query':
            out_cols = self.c_pad
        else:
            out_cols = LANE

        kernel = self._build_kernel(ops, n_pad, out_kind)
        smem_spec = pl.BlockSpec(memory_space=pltpu.MemorySpace.SMEM)
        vmem_spec = pl.BlockSpec(memory_space=pltpu.MemorySpace.VMEM)
        call = pl.pallas_call(
            kernel,
            out_shape=jax.ShapeDtypeStruct((1, out_cols), jnp.float32),
            in_specs=[smem_spec, vmem_spec, vmem_spec],
            out_specs=vmem_spec,
        )

        d_real, d_pad = self.d_real, self.d_pad

        def run(obj, concepts_pad):
            # Single dispatch per question: pad -> fused kernel -> slice.
            n_real = obj.shape[0]
            obj_pad = jnp.zeros((n_pad, d_pad), jnp.float32)
            obj_pad = obj_pad.at[:n_real, :d_real].set(obj)
            n_arr = jnp.full((1,), n_real, jnp.int32)
            out = call(n_arr, obj_pad, concepts_pad)
            if kind == 'mask':
                return out[:, :n_real]
            elif kind == 'query':
                start, cnt = meta
                return out[:, start:start + cnt]
            return out[:, :1]

        fn = jax.jit(run)
        self._cache[key] = fn
        return fn

    # ---- forward -------------------------------------------------------------
    def __call__(self, question, object_annotation):
        obj = jnp.asarray(object_annotation, jnp.float32)
        n_real, d_real = obj.shape
        assert d_real == self.d_real, 'feature dim mismatch with concept bank'
        n_pad = _round_up(max(n_real, 1), LANE)

        ops = self._compile_program(question)
        fn = self._get_executor(ops, n_pad)
        return fn(obj, self.concepts_pad)


# ----------------------------------------------------------------------------
# Pure-numpy (float64) reference executor for correctness checking
# ----------------------------------------------------------------------------

def reference_forward(question, object_annotation, concept_embeddings,
                      attribute_values):
    objs = np.asarray(object_annotation, dtype=np.float64)
    n, d = objs.shape
    cons = {k: np.asarray(v, np.float64).reshape(-1)
            for k, v in concept_embeddings.items()}
    banks = {a: np.stack([cons[c] for c in vals])
             for a, vals in attribute_values.items()}

    def sigmoid(x):
        return 1.0 / (1.0 + np.exp(-x))

    def softmax(x):
        e = np.exp(x - x.max())
        return e / e.sum()

    def query(dist, attr):
        attn = dist @ objs
        return softmax(banks[attr] @ attn / np.sqrt(d))

    bufs = []
    for p in question.program:
        ins = [bufs[i] for i in p.input_ids]
        if p.operator == 'scene':
            bufs.append(np.ones(n))
        elif p.operator == 'filter':
            sim = sigmoid(objs @ cons[p.concept] / np.sqrt(d))
            bufs.append(np.minimum(ins[0], sim))
        elif p.operator == 'unique':
            bufs.append(ins[0] / (ins[0].sum() + 1e-8))
        elif p.operator == 'union':
            bufs.append(np.maximum(ins[0], ins[1]))
        elif p.operator == 'count':
            bufs.append(np.array([ins[0].sum()]))
        elif p.operator == 'exist':
            bufs.append(np.array([ins[0].max()]))
        elif p.operator == 'query':
            bufs.append(query(ins[0], p.attribute))
        elif p.operator == 'query_attribute_equal':
            qa, qb = query(ins[0], p.attribute), query(ins[1], p.attribute)
            bufs.append(np.array([(qa * qb).sum()]))
    return bufs[-1]


# ----------------------------------------------------------------------------
# Deterministic demo
# ----------------------------------------------------------------------------

if __name__ == "__main__":
    N_OBJECTS = 8
    D_FEAT = 32

    ATTRIBUTE_VALUES = {
        'color': ['red', 'green', 'blue', 'yellow'],
        'shape': ['cube', 'sphere', 'cylinder'],
        'size': ['small', 'large'],
    }
    all_concepts = [c for vals in ATTRIBUTE_VALUES.values() for c in vals]

    key = jax.random.PRNGKey(0)
    k_obj, k_con = jax.random.split(key, 2)

    object_annotation = jax.random.normal(k_obj, (N_OBJECTS, D_FEAT),
                                          dtype=jnp.float32)
    concept_matrix = jax.random.normal(k_con, (len(all_concepts), D_FEAT),
                                       dtype=jnp.float32)
    concept_embeddings = {name: concept_matrix[i]
                          for i, name in enumerate(all_concepts)}

    module = ReasoningModule(concept_embeddings, ATTRIBUTE_VALUES)

    # Q1: "How many things are red cubes or blue?" -> count scalar
    q1 = Question(program=[
        ProgramOp('scene'),
        ProgramOp('filter', (0,), concept='red'),
        ProgramOp('filter', (1,), concept='cube'),
        ProgramOp('scene'),
        ProgramOp('filter', (3,), concept='blue'),
        ProgramOp('union', (2, 4)),
        ProgramOp('count', (5,)),
    ])

    # Q2: "Does the red thing have the same shape as the large thing?"
    q2 = Question(program=[
        ProgramOp('scene'),
        ProgramOp('filter', (0,), concept='red'),
        ProgramOp('unique', (1,)),
        ProgramOp('scene'),
        ProgramOp('filter', (3,), concept='large'),
        ProgramOp('unique', (4,)),
        ProgramOp('query_attribute_equal', (2, 5), attribute='shape'),
    ])

    # Q3: "What color is the small sphere?" -> distribution over colors
    q3 = Question(program=[
        ProgramOp('scene'),
        ProgramOp('filter', (0,), concept='small'),
        ProgramOp('filter', (1,), concept='sphere'),
        ProgramOp('unique', (2,)),
        ProgramOp('query', (3,), attribute='color'),
    ])

    r1 = jax.block_until_ready(module(q1, object_annotation))
    r2 = jax.block_until_ready(module(q2, object_annotation))
    r3 = jax.block_until_ready(module(q3, object_annotation))

    assert r1.shape == (1, 1)
    assert r2.shape == (1, 1)
    assert r3.shape == (1, len(ATTRIBUTE_VALUES['color']))
    assert bool(jnp.all(jnp.isfinite(r1)))
    assert bool(jnp.all(jnp.isfinite(r2)))
    assert bool(jnp.all(jnp.isfinite(r3)))

    # Correctness check against the float64 numpy reference executor.
    for q, r in ((q1, r1), (q2, r2), (q3, r3)):
        ref = reference_forward(q, object_annotation, concept_embeddings,
                                ATTRIBUTE_VALUES)
        np.testing.assert_allclose(np.asarray(r).reshape(-1),
                                   np.asarray(ref).reshape(-1),
                                   rtol=5e-3, atol=5e-3)

    print("KERNEL_OK")
</pallas_src>

<mosaic_0001>
module attributes {stable_mosaic.version = 11 : i64} {
  func.func @kernel(%arg0: memref<1xi32, #tpu.memory_space<smem>>, %arg1: memref<128x128xf32, #tpu.memory_space<vmem>>, %arg2: memref<128x128xf32, #tpu.memory_space<vmem>>, %arg3: memref<1x128xf32, #tpu.memory_space<vmem>>) attributes {dimension_semantics = [], scalar_prefetch = 0 : i64, scratch_operands = 0 : i64, tpu.core_type = #tpu.core_type<tc>} {
    %c0 = arith.constant 0 : index
    %0 = memref.load %arg0[%c0] : memref<1xi32, #tpu.memory_space<smem>>
    %1 = tpu.iota {dimensions = array<i32: 1>} : vector<1x128xi32>
    %2 = vector.broadcast %0 : i32 to vector<1x128xi32>
    %3 = arith.cmpi slt, %1, %2 : vector<1x128xi32>
    %4 = arith.extui %3 : vector<1x128xi1> to vector<1x128xi32>
    %5 = arith.sitofp %4 : vector<1x128xi32> to vector<1x128xf32>
    %c0_0 = arith.constant 0 : index
    %c0_1 = arith.constant 0 : index
    %6 = vector.load %arg2[%c0_0, %c0_1] : memref<128x128xf32, #tpu.memory_space<vmem>>, vector<128x128xf32>
    %c0_2 = arith.constant 0 : index
    %c0_3 = arith.constant 0 : index
    %7 = vector.load %arg1[%c0_2, %c0_3] : memref<128x128xf32, #tpu.memory_space<vmem>>, vector<128x128xf32>
    %cst = arith.constant dense<0.000000e+00> : vector<128x128xf32>
    %8 = tpu.matmul %6, %7, %cst {dimension_numbers = #tpu.dot_dimension_numbers<[1], [1], [0], [0], [0, 0, 1, 0], [], []>} : vector<128x128xf32>, vector<128x128xf32>, vector<128x128xf32> -> vector<128x128xf32>
    %9 = vector.extract_strided_slice %8 {offsets = [0, 0], sizes = [1, 128], strides = [1, 1]} : vector<128x128xf32> to vector<1x128xf32>
    %cst_4 = arith.constant 0.176776692 : f32
    %10 = vector.broadcast %cst_4 : f32 to vector<1x128xf32>
    %11 = arith.mulf %9, %10 : vector<1x128xf32>
    %12 = arith.negf %11 : vector<1x128xf32>
    %13 = math.exp %12 : vector<1x128xf32>
    %cst_5 = arith.constant 1.000000e+00 : f32
    %14 = vector.broadcast %cst_5 : f32 to vector<1x128xf32>
    %15 = arith.addf %14, %13 : vector<1x128xf32>
    %16 = arith.divf %14, %15 : vector<1x128xf32>
    %17 = vector.extract_strided_slice %8 {offsets = [2, 0], sizes = [1, 128], strides = [1, 1]} : vector<128x128xf32> to vector<1x128xf32>
    %cst_6 = arith.constant 0.176776692 : f32
    %18 = vector.broadcast %cst_6 : f32 to vector<1x128xf32>
    %19 = arith.mulf %17, %18 : vector<1x128xf32>
    %20 = arith.negf %19 : vector<1x128xf32>
    %21 = math.exp %20 : vector<1x128xf32>
    %cst_7 = arith.constant 1.000000e+00 : f32
    %22 = vector.broadcast %cst_7 : f32 to vector<1x128xf32>
    %23 = arith.addf %22, %21 : vector<1x128xf32>
    %24 = arith.divf %22, %23 : vector<1x128xf32>
    %25 = vector.extract_strided_slice %8 {offsets = [4, 0], sizes = [1, 128], strides = [1, 1]} : vector<128x128xf32> to vector<1x128xf32>
    %cst_8 = arith.constant 0.176776692 : f32
    %26 = vector.broadcast %cst_8 : f32 to vector<1x128xf32>
    %27 = arith.mulf %25, %26 : vector<1x128xf32>
    %28 = arith.negf %27 : vector<1x128xf32>
    %29 = math.exp %28 : vector<1x128xf32>
    %cst_9 = arith.constant 1.000000e+00 : f32
    %30 = vector.broadcast %cst_9 : f32 to vector<1x128xf32>
    %31 = arith.addf %30, %29 : vector<1x128xf32>
    %32 = arith.divf %30, %31 : vector<1x128xf32>
    %33 = arith.minimumf %5, %16 : vector<1x128xf32>
    %34 = arith.minimumf %33, %32 : vector<1x128xf32>
    %35 = arith.minimumf %5, %24 : vector<1x128xf32>
    %36 = arith.maximumf %34, %35 : vector<1x128xf32>
    %cst_10 = arith.constant dense<0.000000e+00> : vector<1xf32>
    %37 = vector.multi_reduction <add>, %36, %cst_10 [1] : vector<1x128xf32> to vector<1xf32>
    %38 = vector.shape_cast %37 : vector<1xf32> to vector<1x1xf32>
    %39 = vector.shape_cast %38 : vector<1x1xf32> to vector<1x1xf32>
    %40 = vector.broadcast %39 : vector<1x1xf32> to vector<1x128xf32>
    %c0_11 = arith.constant 0 : index
    %c0_12 = arith.constant 0 : index
    %41 = vector.load %arg3[%c0_11, %c0_12] : memref<1x128xf32, #tpu.memory_space<vmem>>, vector<1x128xf32>
    tpu.vector_store %arg3[%c0_11, %c0_12], %40 {strides = array<i32>} : memref<1x128xf32, #tpu.memory_space<vmem>>, vector<1x128xf32>,
    return
  }
}

</mosaic_0001>

<bundles_post_ra>
// kernel: run.1
= control target key start
LH: loop header
LB: loop body
LE: loop exit
PB: predicated region body
PF: predicated region fallthrough
CT: control target
= control target key end

     0   :  { %s521_s0 = inlined_call_operand.<no memory space> [shape: s32[1], index: 0, kind: input, shape index: {}]   ;;  %s522_s1 = inlined_call_operand.vmem [shape: f32[128,128], index: 1, kind: input, shape index: {}]   ;;  %s523_s2 = inlined_call_operand.vmem [shape: f32[128,128], index: 2, kind: input, shape index: {}]   ;;  %s524_s3 = inlined_call_operand.hbm [shape: f32[1,128], index: 3, kind: output, shape index: {}]  }
   0x1   :  { %v39_v0 = vld [vmem:[%s522_s1] sm:$0xff]  ;;  %v40_v1 = vld [vmem:[%s522_s1 + $0x8] sm:$0xff]  ;;  %v41_v2 = vld [vmem:[%s522_s1 + $0x10] sm:$0xff] }
   0x2   :  { %v310_v3 = vpack.c.bf16 %v40_v1, %v39_v0  ;;  %v42_v4 = vld [vmem:[%s522_s1 + $0x18] sm:$0xff]  ;;  %v23_v6 = vld [vmem:[%s523_s2] sm:$0xff]  ;;  %v44_v8 = vld [vmem:[%s522_s1 + $0x28] sm:$0xff] }
   0x3   :  { %v314_v5 = vpack.c.bf16 %v42_v4, %v41_v2  ;;  %v43_v7 = vld [vmem:[%s522_s1 + $0x20] sm:$0xff]  ;;  %286 = vmatprep.mubr.f32.mxu0 %v23_v6 }
   0x4   :  { %311 = vmatprep.subr.bf16.mxu0 %v310_v3  ;;  %342 = vmatprep.subr.bf16.mxu1 %v310_v3  ;;  %v31_v9 = vld [vmem:[%s523_s2 + $0x40] sm:$0xff]  ;;  %v318_v10 = vpack.c.bf16 %v44_v8, %v43_v7 }
   0x5   :  { %313 = vmatpush3.bf16.xpose.msra.mxu0 %v310_v3  ;;  %350 = vmatpush3.bf16.xpose.msra.mxu1 %v310_v3 }
   0x6   :  { %315 = vmatprep.subr.bf16.mxu0 %v314_v5  ;;  %343 = vmatprep.subr.bf16.mxu1 %v314_v5 }
   0x7   :  { %298 = vmatprep.mubr.f32.mxu1 %v31_v9 }
   0x8   :  { %9 = vsyncpa [#allocation4], 0  ;;  %v45_v11 = vld [vmem:[%s522_s1 + $0x30] sm:$0xff]  ;;  %v46_v12 = vld [vmem:[%s522_s1 + $0x38] sm:$0xff]  ;;  %v17_v59 = vlaneseq  ;;  %v19_v62 = vstv %s521_s0  ;;  %v388_v63 = vmov 0.0   ;;  %vm201_vm1 = vcmask 1040384  }
   0x9   :  { %v322_v13 = vpack.c.bf16 %v46_v12, %v45_v11  ;;  %v47_v14 = vld [vmem:[%s522_s1 + $0x40] sm:$0xff]  ;;  %v48_v15 = vld [vmem:[%s522_s1 + $0x48] sm:$0xff]  ;;  %v49_v17 = vld [vmem:[%s522_s1 + $0x50] sm:$0xff]  ;;  %s389_s22 = smov [#allocation3]  }
   0xa   :  { %v326_v16 = vpack.c.bf16 %v48_v15, %v47_v14  ;;  %v50_v18 = vld [vmem:[%s522_s1 + $0x58] sm:$0xff]  ;;  %v51_v20 = vld [vmem:[%s522_s1 + $0x60] sm:$0xff]  ;;  %v52_v21 = vld [vmem:[%s522_s1 + $0x68] sm:$0xff]  ;;  %v18_v61 = vand.u32 127, %v17_v59  ;;  %s212_s23 = sshll.u32 %s389_s22, 4  ;;  %s213_s23 = int_to_ptr.vmem [resolvable:$true] %s212_s23 }
   0xb   :  { %v330_v19 = vpack.c.bf16 %v50_v18, %v49_v17  ;;  %v334_v22 = vpack.c.bf16 %v52_v21, %v51_v20  ;;  %v53_v23 = vld [vmem:[%s522_s1 + $0x70] sm:$0xff]  ;;  %v54_v24 = vld [vmem:[%s522_s1 + $0x78] sm:$0xff]  ;;  %v24_v26 = vld [vmem:[%s523_s2 + $0x8] sm:$0xff]  ;;  %s364_s24 = scalar_lea.vmem %s213_s23, 16  ;;  %s368_s0 = scalar_lea.vmem %s213_s23, 32 }
   0xc   :  { %v338_v25 = vpack.c.bf16 %v54_v24, %v53_v23  ;;  %v32_v27 = vld [vmem:[%s523_s2 + $0x48] sm:$0xff]  ;;  %v25_v28 = vld [vmem:[%s523_s2 + $0x10] sm:$0xff]  ;;  %v26_v30 = vld [vmem:[%s523_s2 + $0x18] sm:$0xff]  ;;  %vm20_vm0 = vcmp.lt.s32.totalorder %v18_v61, %v19_v62  ;;  %p365_p0 = scmp.ne.s32.totalorder %s213_s23, %s364_s24  ;;  %p369_p1 = scmp.lt.s32.totalorder %s213_s23, %s213_s23 }
   0xd   :  { %317 = vmatpush3.bf16.xpose.msra.mxu0 %v314_v5  ;;  %351 = vmatpush3.bf16.xpose.msra.mxu1 %v314_v5  ;;  %v33_v29 = vld [vmem:[%s523_s2 + $0x50] sm:$0xff]  ;;  %v34_v31 = vld [vmem:[%s523_s2 + $0x58] sm:$0xff]  ;;  %v27_v32 = vld [vmem:[%s523_s2 + $0x20] sm:$0xff]  ;;  %v220_v0 = vsel %vm20_vm0, 1.0, %v388_v63  ;;  %p370_p2 = scmp.lt.s32.totalorder %s368_s0, %s364_s24 }
   0xe   :  { %319 = vmatprep.subr.bf16.mxu0 %v318_v10  ;;  %344 = vmatprep.subr.bf16.mxu1 %v318_v10  ;;  %v35_v33 = vld [vmem:[%s523_s2 + $0x60] sm:$0xff]  ;;  %v28_v34 = vld [vmem:[%s523_s2 + $0x28] sm:$0xff]  ;;  %v29_v36 = vld [vmem:[%s523_s2 + $0x30] sm:$0xff] }
   0xf   :  { %v36_v35 = vld [vmem:[%s523_s2 + $0x68] sm:$0xff]  ;;  %v37_v37 = vld [vmem:[%s523_s2 + $0x70] sm:$0xff]  ;;  %v30_v38 = vld [vmem:[%s523_s2 + $0x38] sm:$0xff]  ;;  %p371_p3 = por %p370_p2, %p369_p1 }
  0x10   :  { %v38_v39 = vld [vmem:[%s523_s2 + $0x78] sm:$0xff] }
  0x11   :  { %p372_p4 = pnand %p371_p3, %p365_p0 }
  0x15   :  { %321 = vmatpush3.bf16.xpose.msra.mxu0 %v318_v10  ;;  %352 = vmatpush3.bf16.xpose.msra.mxu1 %v318_v10 }
  0x16   :  { %323 = vmatprep.subr.bf16.mxu0 %v322_v13  ;;  %345 = vmatprep.subr.bf16.mxu1 %v322_v13 }
  0x1d   :  { %325 = vmatpush3.bf16.xpose.msra.mxu0 %v322_v13  ;;  %353 = vmatpush3.bf16.xpose.msra.mxu1 %v322_v13 }
  0x1e   :  { %327 = vmatprep.subr.bf16.mxu0 %v326_v16  ;;  %346 = vmatprep.subr.bf16.mxu1 %v326_v16 }
  0x25   :  { %329 = vmatpush3.bf16.xpose.msra.mxu0 %v326_v16  ;;  %354 = vmatpush3.bf16.xpose.msra.mxu1 %v326_v16 }
  0x26   :  { %331 = vmatprep.subr.bf16.mxu0 %v330_v19  ;;  %347 = vmatprep.subr.bf16.mxu1 %v330_v19 }
  0x2d   :  { %333 = vmatpush3.bf16.xpose.msra.mxu0 %v330_v19  ;;  %355 = vmatpush3.bf16.xpose.msra.mxu1 %v330_v19 }
  0x2e   :  { %335 = vmatprep.subr.bf16.mxu0 %v334_v22  ;;  %348 = vmatprep.subr.bf16.mxu1 %v334_v22 }
  0x35   :  { %337 = vmatpush3.bf16.xpose.msra.mxu0 %v334_v22  ;;  %356 = vmatpush3.bf16.xpose.msra.mxu1 %v334_v22 }
  0x36   :  { %339 = vmatprep.subr.bf16.mxu0 %v338_v25  ;;  %349 = vmatprep.subr.bf16.mxu1 %v338_v25 }
  0x3d   :  { %341 = vmatpush3.bf16.xpose.msra.mxu0 %v338_v25  ;;  %357 = vmatpush3.bf16.xpose.msra.mxu1 %v338_v25 }
  0x44   :  { %287 = vmatmul.mubr.f32.vlgmr.msra.gmra.mrb[0].mxu0 %v24_v26  ;;  %299 = vmatmul.mubr.f32.vlgmr.msra.gmra.mrb[0].mxu1 %v32_v27 }
  0x45   :  { %289 = vmatprep.mubr.f32.mxu0 %v25_v28  ;;  %301 = vmatprep.mubr.f32.mxu1 %v33_v29 }
  0x48   :  { %290 = vmatmul.mubr.f32.gmra.mrb[2].mxu0 %v26_v30  ;;  %302 = vmatmul.mubr.f32.gmra.mrb[2].mxu1 %v34_v31 }
  0x49   :  { %292 = vmatprep.mubr.f32.mxu0 %v27_v32  ;;  %304 = vmatprep.mubr.f32.mxu1 %v35_v33 }
  0x4c   :  { %293 = vmatmul.mubr.f32.gmra.mrb[4].mxu0 %v28_v34  ;;  %305 = vmatmul.mubr.f32.gmra.mrb[4].mxu1 %v36_v35 }
  0x4d   :  { %295 = vmatprep.mubr.f32.mxu0 %v29_v36  ;;  %307 = vmatprep.mubr.f32.mxu1 %v37_v37 }
  0x50   :  { %296 = vmatmul.mubr.f32.gmra.mrb[6].mxu0 %v30_v38  ;;  %308 = vmatmul.mubr.f32.gmra.mrb[6].mxu1 %v38_v39 }
 0x117   :  { %v288_v40 = vpop.f32.mrb[0].mxu0  ;;  %v300_v41 = vpop.f32.mrb[0].mxu1 }
 0x118   :  { %v121_v42 = vpop.f32.mrb[1].mxu0  ;;  %v154_v43 = vpop.f32.mrb[1].mxu1 }
 0x119   :  { %v221_v44 = vmul.f32 -0.17677669, %v121_v42 }
 0x11b   :  { %v187_v45 = vmul.f32 1.442695, %v221_v44  ;;  %v291_v46 = vpop.f32.mrb[2].mxu0  ;;  %v303_v47 = vpop.f32.mrb[2].mxu1 }
 0x11c   :  { %v130_v48 = vpop.f32.mrb[3].mxu0  ;;  %v162_v49 = vpop.f32.mrb[3].mxu1 }
 0x11d   :  { %360 = vpow2.f32 %v187_v45 }
 0x11f   :  { %v294_v50 = vpop.f32.mrb[4].mxu0  ;;  %v306_v51 = vpop.f32.mrb[4].mxu1 }
 0x120   :  { %v138_v52 = vpop.f32.mrb[5].mxu0  ;;  %v170_v53 = vpop.f32.mrb[5].mxu1 }
 0x123   :  { %v297_v54 = vpop.f32.mrb[6].mxu0  ;;  %v309_v55 = vpop.f32.mrb[6].mxu1 }
 0x124   :  { %v146_v56 = vpop.f32.mrb[7].mxu0  ;;  %v178_v57 = vpop.f32.mrb[7].mxu1 }
 0x127   :  { %v361_v58 = vpop.eup %360 }
 0x128   :  { %v189_v60 = vadd.f32 1.0, %v361_v58 }
 0x12a   :  { %362 = vrcp.f32 %v189_v60 }
 0x134   :  { %v363_v1 = vpop.eup %362 }
 0x135   :  { %v192_v2 = vmin.f32 %v220_v0, %v363_v1  ;;  %v194_v3 = vrot.slane %v363_v1, 4 }
 0x137   :  { %v196_v4 = vmin.f32 %v192_v2, %v194_v3  ;;  %v198_v5 = vrot.slane %v192_v2, 2 }
 0x139   :  { %v200_v6 = vmax.f32 %v196_v4, %v198_v5 }
 0x13b   :  { %v202_v7 = vsel %vm201_vm1, %v200_v6, 0.0 }
 0x13c   :  { %203 = vadd.xlane.f32.xlu0 %v202_v7 }
 0x1c9   :  { %v204_v8 = vpop.xlane.xlu0 %203 }
 0x1ca   :  { %205 = vst [vmem:[#allocation3] sm:$0x1] %v204_v8 }
 0x1cb   :  { %375 = shalt.err (!%p372_p4)
}
 0x1cc   :  { %s376_s1 = scalar_lea.hbm %s524_s3, 16 }
 0x1cd   :  { %p377_p5 = scmp.ne.s32.totalorder %s524_s3, %s376_s1  ;;  %p380_p6 = scmp.lt.u32.totalorder %s376_s1, %s524_s3 }
 0x1cf   :  { %p382_p7 = pnand %p380_p6, %p377_p5 }
 0x1d1   :  { %385 = shalt.err (!%p382_p7)
}
 0x1d2   :  { %215 = dma.vmem_to_hbm [thread:$0]  %s213_s23, 16, %s524_s3, [#allocation4]  }
 0x1d3   :  { %386 = dma.done.wait [#allocation4], 16  }
 0x1d4   :  { %387 = vsyncadd [#allocation4], 4294967280 }
 0x1d5   :  { %219 = vsyncpa [#allocation4], 1 }

</bundles_post_ra>
